<compile_context>
chip_gen: v7x
topology: tpu7x:2x2x1
jax: 0.10.0
libtpu: 0.0.40
codegen_flags: <defaults>
</compile_context>

<pallas_src>
import functools

import jax
import jax.numpy as jnp
from jax.experimental import pallas as pl
from jax.experimental.pallas import tpu as pltpu


def _round_up(n, m):
    return ((n + m - 1) // m) * m


def _fcn_kernel(x_ref, w1_ref, b1_ref, w2_ref, b2_ref, w3_ref, b3_ref, o_ref):
    # x block: (TB, 784) in its native dtype; weights bf16; biases f32 rows.
    x = x_ref[...].astype(jnp.bfloat16)

    h1 = jnp.dot(x, w1_ref[...], preferred_element_type=jnp.float32)
    h1 = jnp.maximum(h1 + b1_ref[...], 0.0)                    # (TB, 128) f32

    h2 = jnp.dot(h1.astype(jnp.bfloat16), w2_ref[...],
                 preferred_element_type=jnp.float32)
    h2 = jnp.maximum(h2 + b2_ref[...], 0.0)                    # (TB, 64) f32

    h3 = jnp.dot(h2.astype(jnp.bfloat16), w3_ref[...],
                 preferred_element_type=jnp.float32)
    h3 = jnp.maximum(h3 + b3_ref[...], 0.0)                    # (TB, 128pad) f32

    o_ref[...] = h3.astype(o_ref.dtype)


@functools.partial(jax.jit, static_argnames=("tile_b",))
def simple_fcn_forward(x, params, tile_b=1024):
    """x: (B, 1, 28, 28) or (B, 784) float-like.  Returns (B, num_classes) f32."""
    w1, b1, w2, b2, w3, b3 = params
    x2d = x.reshape(-1, 28 * 28)
    B = x2d.shape[0]
    num_classes = w3.shape[1]

    # --- lane-dense output: pad final layer to a multiple of 128 columns ---
    n_pad = _round_up(max(num_classes, 1), 128)
    w3p = jnp.zeros((w3.shape[0], n_pad), w3.dtype).at[:, :num_classes].set(w3)
    b3p = jnp.zeros((n_pad,), b3.dtype).at[:num_classes].set(b3)

    # --- resident weights in bf16, biases as f32 rows ---
    w1b = w1.astype(jnp.bfloat16)
    w2b = w2.astype(jnp.bfloat16)
    w3b = w3p.astype(jnp.bfloat16)
    b1r = b1.reshape(1, -1).astype(jnp.float32)
    b2r = b2.reshape(1, -1).astype(jnp.float32)
    b3r = b3p.reshape(1, -1).astype(jnp.float32)

    # --- x streams in its native dtype; cast to bf16 happens in-kernel ---
    if x2d.dtype == jnp.bfloat16:
        xs = x2d
    else:
        xs = x2d.astype(jnp.float32)

    # --- batch tiling: tile is a multiple of 16 rows; pad only if needed ---
    TB = max(16, min(_round_up(int(tile_b), 16), _round_up(B, 16)))
    if B % TB == 0:
        xs_in, Bp = xs, B
    else:
        Bp = _round_up(B, TB)
        xs_in = jnp.zeros((Bp, 28 * 28), xs.dtype).at[:B].set(xs)

    grid = (Bp // TB,)

    def resident(shape):
        # Constant index map -> block stays in VMEM across all grid steps.
        return pl.BlockSpec(shape, lambda i: (0,) * len(shape))

    out = pl.pallas_call(
        _fcn_kernel,
        out_shape=jax.ShapeDtypeStruct((Bp, n_pad), jnp.float32),
        grid=grid,
        in_specs=[
            pl.BlockSpec((TB, 28 * 28), lambda i: (i, 0)),   # x: batch-tiled
            resident(w1b.shape), resident(b1r.shape),
            resident(w2b.shape), resident(b2r.shape),
            resident(w3b.shape), resident(b3r.shape),
        ],
        out_specs=pl.BlockSpec((TB, n_pad), lambda i: (i, 0)),
        compiler_params=pltpu.CompilerParams(
            dimension_semantics=("parallel",)),
    )(xs_in, w1b, b1r, w2b, b2r, w3b, b3r)

    return out[:B, :num_classes]


def init_params(key, num_classes=10):
    """Deterministic synthetic parameters matching nn.Linear shapes.

    Stored as (in_features, out_features) so the kernel computes x @ W + b
    (equivalent to torch's x @ W.T with torch's (out, in) layout).
    """
    dims = [(28 * 28, 128), (128, 64), (64, num_classes)]
    params = []
    for (din, dout) in dims:
        key, kw, kb = jax.random.split(key, 3)
        bound = 1.0 / jnp.sqrt(din)  # torch Linear default init range
        w = jax.random.uniform(kw, (din, dout), jnp.float32, -bound, bound)
        b = jax.random.uniform(kb, (dout,), jnp.float32, -bound, bound)
        params += [w, b]
    return tuple(params)


if __name__ == "__main__":
    key = jax.random.PRNGKey(0)
    kx, kp = jax.random.split(key)

    # Small MNIST-like batch: NCHW (2, 1, 28, 28), values in [0, 1).
    x = jax.random.uniform(kx, (2, 1, 28, 28), jnp.float32)
    params = init_params(kp, num_classes=10)

    out = simple_fcn_forward(x, params)
    jax.block_until_ready(out)

    # Reference computed with the same bf16-operand / f32-accumulate recipe.
    w1, b1, w2, b2, w3, b3 = params
    xr = x.reshape(-1, 784).astype(jnp.bfloat16)
    ref = jnp.maximum(
        jnp.dot(xr, w1.astype(jnp.bfloat16),
                preferred_element_type=jnp.float32) + b1, 0.0)
    ref = jnp.maximum(
        jnp.dot(ref.astype(jnp.bfloat16), w2.astype(jnp.bfloat16),
                preferred_element_type=jnp.float32) + b2, 0.0)
    ref = jnp.maximum(
        jnp.dot(ref.astype(jnp.bfloat16), w3.astype(jnp.bfloat16),
                preferred_element_type=jnp.float32) + b3, 0.0)

    assert out.shape == (2, 10)
    assert jnp.allclose(out, ref, atol=2e-2, rtol=2e-2)

    print("KERNEL_OK")
</pallas_src>

<mosaic_0001>
module attributes {stable_mosaic.version = 11 : i64} {
  func.func @_fcn_kernel(%arg0: i32, %arg1: memref<16x784xf32, #tpu.memory_space<vmem>>, %arg2: memref<784x128xbf16, #tpu.memory_space<vmem>>, %arg3: memref<1x128xf32, #tpu.memory_space<vmem>>, %arg4: memref<128x64xbf16, #tpu.memory_space<vmem>>, %arg5: memref<1x64xf32, #tpu.memory_space<vmem>>, %arg6: memref<64x128xbf16, #tpu.memory_space<vmem>>, %arg7: memref<1x128xf32, #tpu.memory_space<vmem>>, %arg8: memref<16x128xf32, #tpu.memory_space<vmem>>) attributes {dimension_semantics = [#tpu.dimension_semantics<parallel>], iteration_bounds = array<i64: 1>, scalar_prefetch = 0 : i64, scratch_operands = 0 : i64, tpu.core_type = #tpu.core_type<tc>, window_params = [{transform_indices = @transform_0, window_bounds = array<i64: 16, 784>}, {pipeline_mode = #tpu.pipeline_mode<synchronous>, transform_indices = @transform_1, window_bounds = array<i64: 784, 128>}, {pipeline_mode = #tpu.pipeline_mode<synchronous>, transform_indices = @transform_2, window_bounds = array<i64: 1, 128>}, {pipeline_mode = #tpu.pipeline_mode<synchronous>, transform_indices = @transform_3, window_bounds = array<i64: 128, 64>}, {pipeline_mode = #tpu.pipeline_mode<synchronous>, transform_indices = @transform_4, window_bounds = array<i64: 1, 64>}, {pipeline_mode = #tpu.pipeline_mode<synchronous>, transform_indices = @transform_5, window_bounds = array<i64: 64, 128>}, {pipeline_mode = #tpu.pipeline_mode<synchronous>, transform_indices = @transform_6, window_bounds = array<i64: 1, 128>}, {transform_indices = @transform_7, window_bounds = array<i64: 16, 128>}]} {
    %c0 = arith.constant 0 : index
    %c0_0 = arith.constant 0 : index
    %0 = vector.load %arg1[%c0, %c0_0] : memref<16x784xf32, #tpu.memory_space<vmem>>, vector<16x784xf32>
    %1 = arith.truncf %0 : vector<16x784xf32> to vector<16x784xbf16>
    %c0_1 = arith.constant 0 : index
    %c0_2 = arith.constant 0 : index
    %2 = vector.load %arg2[%c0_1, %c0_2] : memref<784x128xbf16, #tpu.memory_space<vmem>>, vector<784x128xbf16>
    %cst = arith.constant dense<0.000000e+00> : vector<16x128xf32>
    %3 = tpu.matmul %1, %2, %cst {dimension_numbers = #tpu.dot_dimension_numbers<[1], [0], [0], [1], [0, 0, 1, 1], [], []>} : vector<16x784xbf16>, vector<784x128xbf16>, vector<16x128xf32> -> vector<16x128xf32>
    %c0_3 = arith.constant 0 : index
    %c0_4 = arith.constant 0 : index
    %4 = vector.load %arg3[%c0_3, %c0_4] : memref<1x128xf32, #tpu.memory_space<vmem>>, vector<1x128xf32>
    %5 = vector.broadcast %4 : vector<1x128xf32> to vector<16x128xf32>
    %6 = arith.addf %3, %5 : vector<16x128xf32>
    %cst_5 = arith.constant 0.000000e+00 : f32
    %7 = vector.broadcast %cst_5 : f32 to vector<16x128xf32>
    %8 = arith.maximumf %6, %7 : vector<16x128xf32>
    %9 = arith.truncf %8 : vector<16x128xf32> to vector<16x128xbf16>
    %c0_6 = arith.constant 0 : index
    %c0_7 = arith.constant 0 : index
    %10 = vector.load %arg4[%c0_6, %c0_7] : memref<128x64xbf16, #tpu.memory_space<vmem>>, vector<128x64xbf16>
    %cst_8 = arith.constant dense<0.000000e+00> : vector<16x64xf32>
    %11 = tpu.matmul %9, %10, %cst_8 {dimension_numbers = #tpu.dot_dimension_numbers<[1], [0], [0], [1], [0, 0, 1, 1], [], []>} : vector<16x128xbf16>, vector<128x64xbf16>, vector<16x64xf32> -> vector<16x64xf32>
    %c0_9 = arith.constant 0 : index
    %c0_10 = arith.constant 0 : index
    %12 = vector.load %arg5[%c0_9, %c0_10] : memref<1x64xf32, #tpu.memory_space<vmem>>, vector<1x64xf32>
    %13 = vector.broadcast %12 : vector<1x64xf32> to vector<16x64xf32>
    %14 = arith.addf %11, %13 : vector<16x64xf32>
    %cst_11 = arith.constant 0.000000e+00 : f32
    %15 = vector.broadcast %cst_11 : f32 to vector<16x64xf32>
    %16 = arith.maximumf %14, %15 : vector<16x64xf32>
    %17 = arith.truncf %16 : vector<16x64xf32> to vector<16x64xbf16>
    %c0_12 = arith.constant 0 : index
    %c0_13 = arith.constant 0 : index
    %18 = vector.load %arg6[%c0_12, %c0_13] : memref<64x128xbf16, #tpu.memory_space<vmem>>, vector<64x128xbf16>
    %cst_14 = arith.constant dense<0.000000e+00> : vector<16x128xf32>
    %19 = tpu.matmul %17, %18, %cst_14 {dimension_numbers = #tpu.dot_dimension_numbers<[1], [0], [0], [1], [0, 0, 1, 1], [], []>} : vector<16x64xbf16>, vector<64x128xbf16>, vector<16x128xf32> -> vector<16x128xf32>
    %c0_15 = arith.constant 0 : index
    %c0_16 = arith.constant 0 : index
    %20 = vector.load %arg7[%c0_15, %c0_16] : memref<1x128xf32, #tpu.memory_space<vmem>>, vector<1x128xf32>
    %21 = vector.broadcast %20 : vector<1x128xf32> to vector<16x128xf32>
    %22 = arith.addf %19, %21 : vector<16x128xf32>
    %cst_17 = arith.constant 0.000000e+00 : f32
    %23 = vector.broadcast %cst_17 : f32 to vector<16x128xf32>
    %24 = arith.maximumf %22, %23 : vector<16x128xf32>
    %c0_18 = arith.constant 0 : index
    %c0_19 = arith.constant 0 : index
    %25 = vector.load %arg8[%c0_18, %c0_19] : memref<16x128xf32, #tpu.memory_space<vmem>>, vector<16x128xf32>
    tpu.vector_store %arg8[%c0_18, %c0_19], %24 {strides = array<i32>} : memref<16x128xf32, #tpu.memory_space<vmem>>, vector<16x128xf32>,
    return
  }
  func.func @transform_0(%arg0: i32) -> (i32, i32) {
    %c0_i32 = arith.constant 0 : i32
    %c0_i32_0 = arith.constant 0 : i32
    return %arg0, %c0_i32 : i32, i32
  }
  func.func @transform_1(%arg0: i32) -> (i32, i32) {
    %c0_i32 = arith.constant 0 : i32
    %c0_i32_0 = arith.constant 0 : i32
    %c0_i32_1 = arith.constant 0 : i32
    return %c0_i32, %c0_i32_0 : i32, i32
  }
  func.func @transform_2(%arg0: i32) -> (i32, i32) {
    %c0_i32 = arith.constant 0 : i32
    %c0_i32_0 = arith.constant 0 : i32
    %c0_i32_1 = arith.constant 0 : i32
    return %c0_i32, %c0_i32_0 : i32, i32
  }
  func.func @transform_3(%arg0: i32) -> (i32, i32) {
    %c0_i32 = arith.constant 0 : i32
    %c0_i32_0 = arith.constant 0 : i32
    %c0_i32_1 = arith.constant 0 : i32
    return %c0_i32, %c0_i32_0 : i32, i32
  }
  func.func @transform_4(%arg0: i32) -> (i32, i32) {
    %c0_i32 = arith.constant 0 : i32
    %c0_i32_0 = arith.constant 0 : i32
    %c0_i32_1 = arith.constant 0 : i32
    return %c0_i32, %c0_i32_0 : i32, i32
  }
  func.func @transform_5(%arg0: i32) -> (i32, i32) {
    %c0_i32 = arith.constant 0 : i32
    %c0_i32_0 = arith.constant 0 : i32
    %c0_i32_1 = arith.constant 0 : i32
    return %c0_i32, %c0_i32_0 : i32, i32
  }
  func.func @transform_6(%arg0: i32) -> (i32, i32) {
    %c0_i32 = arith.constant 0 : i32
    %c0_i32_0 = arith.constant 0 : i32
    %c0_i32_1 = arith.constant 0 : i32
    return %c0_i32, %c0_i32_0 : i32, i32
  }
  func.func @transform_7(%arg0: i32) -> (i32, i32) {
    %c0_i32 = arith.constant 0 : i32
    %c0_i32_0 = arith.constant 0 : i32
    return %arg0, %c0_i32 : i32, i32
  }
}

</mosaic_0001>

<bundles_post_ra>
// kernel: simple_fcn_forward.1
= control target key start
LH: loop header
LB: loop body
LE: loop exit
PB: predicated region body
PF: predicated region fallthrough
CT: control target
= control target key end

     0   :  { %v1074_v43 = vmov 0.0   ;;  %vm1075_vm0 = vmmov 0   ;;  %vm447_vm1 = vcmask 130048   ;;  %vm772_vm2 = vcmask 523264   ;;  %s1375_s1 = inlined_call_operand.vmem [shape: bf16[784,128], index: 1, kind: input, shape index: {}]   ;;  %s1376_s0 = inlined_call_operand.vmem [shape: f32[16,784], index: 0, kind: input, shape index: {}]   ;;  %s1377_s3 = inlined_call_operand.vmem [shape: bf16[128,64], index: 3, kind: input, shape index: {}]   ;;  %s1378_s5 = inlined_call_operand.vmem [shape: bf16[64,128], index: 5, kind: input, shape index: {}]   ;;  %s1379_s2 = inlined_call_operand.vmem [shape: f32[1,128], index: 2, kind: input, shape index: {}]   ;;  %s1380_s4 = inlined_call_operand.vmem [shape: f32[1,64], index: 4, kind: input, shape index: {}]   ;;  %s1381_s6 = inlined_call_operand.vmem [shape: f32[1,128], index: 6, kind: input, shape index: {}]   ;;  %s1382_s7 = inlined_call_operand.vmem [shape: f32[16,128], index: 7, kind: output, shape index: {}]  }
   0x1   :  { %v1013_v0 = vld [vmem:[%s1375_s1 + $0x40] sm:$0xff]   ;;  %v1017_v4 = vld [vmem:[%s1375_s1 + $0x48] sm:$0xff]   ;;  %v1021_v8 = vld [vmem:[%s1375_s1 + $0x50] sm:$0xff]  }
   0x2   :  { %v1014_v1 = vld [vmem:[%s1375_s1] sm:$0xff]   ;;  %891 = vmatprep.subr.bf16.mxu0 %v1013_v0  ;;  %v1018_v5 = vld [vmem:[%s1375_s1 + $0x8] sm:$0xff]   ;;  %v1022_v9 = vld [vmem:[%s1375_s1 + $0x10] sm:$0xff]  }
   0x3   :  { %v1015_v2 = vld [vmem:[%s1375_s1 + $0xc0] sm:$0xff]   ;;  %892 = vmatpush3.bf16.msra.mxu0 %v1014_v1  ;;  %v1019_v6 = vld [vmem:[%s1375_s1 + $0xc8] sm:$0xff]   ;;  %v1023_v10 = vld [vmem:[%s1375_s1 + $0xd0] sm:$0xff]  }
   0x4   :  { %v1016_v3 = vld [vmem:[%s1375_s1 + $0x80] sm:$0xff]   ;;  %913 = vmatprep.subr.bf16.mxu1 %v1015_v2  ;;  %893 = vmatprep.subr.bf16.mxu0 %v1017_v4  ;;  %v1020_v7 = vld [vmem:[%s1375_s1 + $0x88] sm:$0xff]   ;;  %v1024_v11 = vld [vmem:[%s1375_s1 + $0x90] sm:$0xff]  }
   0x5   :  { %914 = vmatpush3.bf16.msra.mxu1 %v1016_v3  ;;  %v1025_v12 = vld [vmem:[%s1375_s1 + $0x58] sm:$0xff]   ;;  %v1029_v16 = vld [vmem:[%s1375_s1 + $0x60] sm:$0xff]   ;;  %v1033_v20 = vld [vmem:[%s1375_s1 + $0x68] sm:$0xff]  }
   0x6   :  { %915 = vmatprep.subr.bf16.mxu1 %v1019_v6  ;;  %v1026_v13 = vld [vmem:[%s1375_s1 + $0x18] sm:$0xff]   ;;  %v1030_v17 = vld [vmem:[%s1375_s1 + $0x20] sm:$0xff]   ;;  %v1034_v21 = vld [vmem:[%s1375_s1 + $0x28] sm:$0xff]  }
   0x7   :  { %894 = vmatpush3.bf16.msra.mxu0 %v1018_v5  ;;  %v1027_v14 = vld [vmem:[%s1375_s1 + $0xd8] sm:$0xff]   ;;  %v1031_v18 = vld [vmem:[%s1375_s1 + $0xe0] sm:$0xff]   ;;  %v1035_v22 = vld [vmem:[%s1375_s1 + $0xe8] sm:$0xff]  }
   0x8   :  { %895 = vmatprep.subr.bf16.mxu0 %v1021_v8  ;;  %v1028_v15 = vld [vmem:[%s1375_s1 + $0x98] sm:$0xff]   ;;  %v1032_v19 = vld [vmem:[%s1375_s1 + $0xa0] sm:$0xff]   ;;  %v1036_v23 = vld [vmem:[%s1375_s1 + $0xa8] sm:$0xff]  }
   0x9   :  { %916 = vmatpush3.bf16.msra.mxu1 %v1020_v7  ;;  %v1037_v24 = vld [vmem:[%s1375_s1 + $0x70] sm:$0xff]   ;;  %v1041_v28 = vld [vmem:[%s1375_s1 + $0x78] sm:$0xff]   ;;  %v28_v31 = vld [vmem:[%s1376_s0 + $0x8] sm:$0xff] }
   0xa   :  { %917 = vmatprep.subr.bf16.mxu1 %v1023_v10  ;;  %v1038_v25 = vld [vmem:[%s1375_s1 + $0x30] sm:$0xff]   ;;  %v1042_v29 = vld [vmem:[%s1375_s1 + $0x38] sm:$0xff]   ;;  %v35_v32 = vld [vmem:[%s1376_s0 + $0x40] sm:$0xff] }
   0xb   :  { %896 = vmatpush3.bf16.msra.mxu0 %v1022_v9  ;;  %v1039_v26 = vld [vmem:[%s1375_s1 + $0xf0] sm:$0xff]   ;;  %v1043_v30 = vld [vmem:[%s1375_s1 + $0xf8] sm:$0xff]   ;;  %v42_v33 = vpack.c.bf16 %v35_v32, %v28_v31  ;;  %v27_v35 = vld [vmem:[%s1376_s0] sm:$0xff] }
   0xc   :  { %897 = vmatprep.subr.bf16.mxu0 %v1025_v12  ;;  %v1040_v27 = vld [vmem:[%s1375_s1 + $0xb0] sm:$0xff]   ;;  %v1044_v34 = vld [vmem:[%s1375_s1 + $0xb8] sm:$0xff]   ;;  %v1045_v38 = vld [vmem:[%s1375_s1 + $0x140] sm:$0xff]  }
   0xd   :  { %918 = vmatpush3.bf16.msra.mxu1 %v1024_v11  ;;  %v34_v36 = vld [vmem:[%s1376_s0 + $0x38] sm:$0xff]  ;;  %483 = vmatprep.mubr.bf16.mxu0 %v42_v33  ;;  %v37_v40 = vld [vmem:[%s1376_s0 + $0x50] sm:$0xff]  ;;  %v1046_v42 = vld [vmem:[%s1375_s1 + $0x100] sm:$0xff]  }
   0xe   :  { %919 = vmatprep.subr.bf16.mxu1 %v1027_v14  ;;  %v41_v37 = vpack.c.bf16 %v34_v36, %v27_v35  ;;  %v30_v39 = vld [vmem:[%s1376_s0 + $0x18] sm:$0xff]  ;;  %v29_v44 = vld [vmem:[%s1376_s0 + $0x10] sm:$0xff]  ;;  %v36_v45 = vld [vmem:[%s1376_s0 + $0x48] sm:$0xff] }
   0xf   :  { %898 = vmatpush3.bf16.msra.mxu0 %v1026_v13  ;;  %v44_v41 = vpack.c.bf16 %v37_v40, %v30_v39  ;;  %v43_v46 = vpack.c.bf16 %v36_v45, %v29_v44  ;;  %v1047_v47 = vld [vmem:[%s1375_s1 + $0x148] sm:$0xff]   ;;  %v1049_v49 = vld [vmem:[%s1375_s1 + $0x150] sm:$0xff]   ;;  %v1051_v51 = vld [vmem:[%s1375_s1 + $0x158] sm:$0xff]  }
  0x10   :  { %899 = vmatprep.subr.bf16.mxu0 %v1029_v16  ;;  %v1048_v48 = vld [vmem:[%s1375_s1 + $0x108] sm:$0xff]   ;;  %v1050_v50 = vld [vmem:[%s1375_s1 + $0x110] sm:$0xff]   ;;  %v1052_v52 = vld [vmem:[%s1375_s1 + $0x118] sm:$0xff]  }
  0x11   :  { %920 = vmatpush3.bf16.msra.mxu1 %v1028_v15  ;;  %524 = vmatprep.mubr.bf16.mxu1 %v44_v41  ;;  %v1053_v53 = vld [vmem:[%s1375_s1 + $0x160] sm:$0xff]   ;;  %v1055_v55 = vld [vmem:[%s1375_s1 + $0x168] sm:$0xff]   ;;  %v33_v61 = vld [vmem:[%s1376_s0 + $0x30] sm:$0xff] }
  0x12   :  { %921 = vmatprep.subr.bf16.mxu1 %v1031_v18  ;;  %v1054_v54 = vld [vmem:[%s1375_s1 + $0x120] sm:$0xff]   ;;  %v32_v57 = vld [vmem:[%s1376_s0 + $0x28] sm:$0xff]  ;;  %v1057_v63 = vld [vmem:[%s1375_s1 + $0x170] sm:$0xff]  }
  0x13   :  { %900 = vmatpush3.bf16.msra.mxu0 %v1030_v17  ;;  %v1061_v56 = vld [vmem:[%s1375_s1 + $0x180] sm:$0xff]   ;;  %v1056_v59 = vld [vmem:[%s1375_s1 + $0x128] sm:$0xff]   ;;  %v1058_v1 = vld [vmem:[%s1375_s1 + $0x130] sm:$0xff]  }
  0x14   :  { %901 = vmatprep.subr.bf16.mxu0 %v1033_v20  ;;  %v39_v58 = vld [vmem:[%s1376_s0 + $0x60] sm:$0xff]  ;;  %v40_v62 = vld [vmem:[%s1376_s0 + $0x68] sm:$0xff]  ;;  %v1059_v2 = vld [vmem:[%s1375_s1 + $0x178] sm:$0xff]  }
  0x15   :  { %922 = vmatpush3.bf16.msra.mxu1 %v1032_v19  ;;  %v46_v60 = vpack.c.bf16 %v39_v58, %v32_v57  ;;  %v47_v0 = vpack.c.bf16 %v40_v62, %v33_v61  ;;  %v1060_v3 = vld [vmem:[%s1375_s1 + $0x138] sm:$0xff]   ;;  %v31_v4 = vld [vmem:[%s1376_s0 + $0x20] sm:$0xff]  ;;  %v1063_v8 = vld [vmem:[%s1377_s3 + $0x8] sm:$0xff]  }
  0x16   :  { %923 = vmatprep.subr.bf16.mxu1 %v1035_v22  ;;  %v38_v5 = vld [vmem:[%s1376_s0 + $0x58] sm:$0xff]  ;;  %v1062_v7 = vld [vmem:[%s1377_s3] sm:$0xff]   ;;  %v1064_v9 = vld [vmem:[%s1377_s3 + $0x10] sm:$0xff]  }
  0x17   :  { %902 = vmatpush3.bf16.msra.mxu0 %v1034_v21  ;;  %v45_v6 = vpack.c.bf16 %v38_v5, %v31_v4  ;;  %v1065_v10 = vld [vmem:[%s1377_s3 + $0x18] sm:$0xff]   ;;  %v1066_v11 = vld [vmem:[%s1377_s3 + $0x20] sm:$0xff]   ;;  %v1067_v12 = vld [vmem:[%s1377_s3 + $0x28] sm:$0xff]  }
  0x18   :  { %903 = vmatprep.subr.bf16.mxu0 %v1037_v24  ;;  %v1068_v13 = vld [vmem:[%s1377_s3 + $0x30] sm:$0xff]   ;;  %v1069_v14 = vld [vmem:[%s1377_s3 + $0x38] sm:$0xff]   ;;  %v1070_v15 = vld [vmem:[%s1378_s5] sm:$0xff]  }
  0x19   :  { %924 = vmatpush3.bf16.msra.mxu1 %v1036_v23  ;;  %v1071_v16 = vld [vmem:[%s1378_s5 + $0x8] sm:$0xff]   ;;  %v825_v18 = vld [vmem:[%s1379_s2] ss:$0 sm:$0xff] }
  0x1a   :  { %925 = vmatprep.subr.bf16.mxu1 %v1039_v26 }
  0x1b   :  { %904 = vmatpush3.bf16.msra.mxu0 %v1038_v25 }
  0x1c   :  { %905 = vmatprep.subr.bf16.mxu0 %v1041_v28 }
  0x1d   :  { %926 = vmatpush3.bf16.msra.mxu1 %v1040_v27 }
  0x1e   :  { %927 = vmatprep.subr.bf16.mxu1 %v1043_v30 }
  0x1f   :  { %906 = vmatpush3.bf16.msra.mxu0 %v1042_v29 }
  0x20   :  { %935 = vmatprep.subr.bf16.mxu0 %v1045_v38 }
  0x21   :  { %928 = vmatpush3.bf16.msra.mxu1 %v1044_v34 }
  0x22   :  { %973 = vmatprep.subr.bf16.mxu1 %v1074_v43  ;;  %484 = vmatmul.mubr.bf16.vlgmr.msra.gmra.mrb[0].mxu0 %v41_v37 }
  0x23   :  { %936 = vmatpush3.bf16.msra.mxu0 %v1046_v42  ;;  %565 = vmatprep.mubr.bf16.mxu0 %v46_v60 }
  0x24   :  { %525 = vmatmul.mubr.bf16.vlgmr.msra.gmra.mrb[0].mxu1 %v43_v46  ;;  %937 = vmatprep.subr.bf16.mxu0 %v1047_v47 }
  0x25   :  { %975 = vmatprep.mubr.msk.bf16.mxu1 %vm1075_vm0, %v1074_v43  ;;  %974 = vmatpush3.bf16.msra.mxu1 %v1061_v56 }
  0x26   :  { %979 = vmatprep.subr.bf16.mxu1 %v1074_v43 }
  0x27   :  { %938 = vmatpush3.bf16.msra.mxu0 %v1048_v48 }
  0x28   :  { %939 = vmatprep.subr.bf16.mxu0 %v1049_v49 }
  0x2b   :  { %940 = vmatpush3.bf16.msra.mxu0 %v1050_v50 }
  0x2c   :  { %941 = vmatprep.subr.bf16.mxu0 %v1051_v51  ;;  %976 = vmatmul.mubr.msk.bf16.vlgmr.msra.gmra.mrb[4].mxu1 %vm447_vm1, %v47_v0 }
  0x2d   :  { %995 = vmatprep.mubr.msk.bf16.mxu1 %vm1075_vm0, %v1074_v43  ;;  %980 = vmatpush3.bf16.msra.mxu1 %v1062_v7 }
  0x2e   :  { %981 = vmatprep.subr.bf16.mxu1 %v1074_v43 }
  0x2f   :  { %942 = vmatpush3.bf16.msra.mxu0 %v1052_v52  ;;  %v1072_v52 = vld [vmem:[%s1378_s5 + $0x10] sm:$0xff]  }
  0x30   :  { %943 = vmatprep.subr.bf16.mxu0 %v1053_v53  ;;  %v1073_v53 = vld [vmem:[%s1378_s5 + $0x18] sm:$0xff]  }
  0x31   :  { %982 = vmatpush3.bf16.msra.mxu1 %v1063_v8 }
  0x32   :  { %983 = vmatprep.subr.bf16.mxu1 %v1074_v43 }
  0x33   :  { %944 = vmatpush3.bf16.msra.mxu0 %v1054_v54  ;;  %v876_v54 = vld [vmem:[%s1380_s4] ss:$0 sm:$0xff] }
  0x34   :  { %945 = vmatprep.subr.bf16.mxu0 %v1055_v55 }
  0x35   :  { %984 = vmatpush3.bf16.msra.mxu1 %v1064_v9 }
  0x36   :  { %985 = vmatprep.subr.bf16.mxu1 %v1074_v43 }
  0x37   :  { %946 = vmatpush3.bf16.msra.mxu0 %v1056_v59 }
  0x38   :  { %947 = vmatprep.subr.bf16.mxu0 %v1057_v63 }
  0x39   :  { %986 = vmatpush3.bf16.msra.mxu1 %v1065_v10 }
  0x3a   :  { %987 = vmatprep.subr.bf16.mxu1 %v1074_v43 }
  0x3b   :  { %948 = vmatpush3.bf16.msra.mxu0 %v1058_v1 }
  0x3c   :  { %949 = vmatprep.subr.bf16.mxu0 %v1059_v2 }
  0x3d   :  { %988 = vmatpush3.bf16.msra.mxu1 %v1066_v11 }
  0x3e   :  { %989 = vmatprep.subr.bf16.mxu1 %v1074_v43 }
  0x3f   :  { %950 = vmatpush3.bf16.msra.mxu0 %v1060_v3 }
  0x40   :  { %999 = vmatprep.subr.bf16.mxu0 %v1074_v43 }
  0x41   :  { %990 = vmatpush3.bf16.msra.mxu1 %v1067_v12 }
  0x42   :  { %566 = vmatmul.mubr.bf16.vlgmr.msra.gmra.mrb[4].mxu0 %v45_v6  ;;  %991 = vmatprep.subr.bf16.mxu1 %v1074_v43 }
  0x43   :  { %1007 = vmatprep.mubr.msk.bf16.mxu0 %vm1075_vm0, %v1074_v43  ;;  %1000 = vmatpush3.bf16.msra.mxu0 %v1070_v15 }
  0x44   :  { %1001 = vmatprep.subr.bf16.mxu0 %v1074_v43 }
  0x45   :  { %992 = vmatpush3.bf16.msra.mxu1 %v1068_v13 }
  0x46   :  { %993 = vmatprep.subr.bf16.mxu1 %v1074_v43 }
  0x47   :  { %1002 = vmatpush3.bf16.msra.mxu0 %v1071_v16 }
  0x48   :  { %1003 = vmatprep.subr.bf16.mxu0 %v1074_v43 }
  0x49   :  { %994 = vmatpush3.bf16.msra.mxu1 %v1069_v14 }
  0x4b   :  { %1004 = vmatpush3.bf16.msra.mxu0 %v1072_v52 }
  0x4c   :  { %1005 = vmatprep.subr.bf16.mxu0 %v1074_v43  ;;  %v885_v43 = vld [vmem:[%s1381_s6] ss:$0 sm:$0xff] }
  0x4f   :  { %1006 = vmatpush3.bf16.msra.mxu0 %v1073_v53 }
  0xf5   :  { %v907_v17 = vpop.f32.mrb[0].mxu0 }
  0xf6   :  { %v908_v19 = vpop.f32.mrb[1].mxu0 }
  0xf7   :  { %v909_v20 = vadd.f32 %v908_v19, %v907_v17  ;;  %v910_v21 = vpop.f32.mrb[2].mxu0  ;;  %v929_v22 = vpop.f32.mrb[0].mxu1 }
  0xf8   :  { %v911_v23 = vpop.f32.mrb[3].mxu0  ;;  %v930_v26 = vpop.f32.mrb[1].mxu1 }
  0xf9   :  { %v486_v24 = vadd.f32 %v909_v20, %v825_v18  ;;  %v912_v25 = vadd.f32 %v911_v23, %v910_v21  ;;  %v931_v27 = vadd.f32 %v930_v26, %v929_v22  ;;  %v932_v28 = vpop.f32.mrb[2].mxu1 }
  0xfa   :  { %v933_v30 = vpop.f32.mrb[3].mxu1 }
  0xfb   :  { %v489_v29 = vadd.f32 %v912_v25, %v825_v18  ;;  %v527_v31 = vadd.f32 %v931_v27, %v486_v24  ;;  %v934_v32 = vadd.f32 %v933_v30, %v932_v28 }
  0xfd   :  { %v530_v33 = vadd.f32 %v934_v32, %v489_v29 }
  0xff   :  { %v608_v34 = vpop.f32.mrb[4].mxu1 }
 0x100   :  { %v977_v35 = vpop.f32.mrb[5].mxu1 }
 0x101   :  { %v611_v36 = vpop.f32.mrb[6].mxu1 }
 0x102   :  { %v978_v37 = vpop.f32.mrb[7].mxu1 }
 0x115   :  { %v951_v38 = vpop.f32.mrb[4].mxu0 }
 0x116   :  { %v952_v39 = vpop.f32.mrb[5].mxu0 }
 0x117   :  { %v953_v40 = vadd.f32 %v952_v39, %v951_v38  ;;  %v954_v41 = vpop.f32.mrb[6].mxu0 }
 0x118   :  { %v955_v42 = vpop.f32.mrb[7].mxu0 }
 0x119   :  { %v568_v44 = vadd.f32 %v953_v40, %v527_v31  ;;  %v956_v45 = vadd.f32 %v955_v42, %v954_v41 }
 0x11b   :  { %v609_v46 = vadd.f32 %v608_v34, %v568_v44  ;;  %v571_v47 = vadd.f32 %v956_v45, %v530_v33 }
 0x11d   :  { %v612_v48 = vadd.f32 %v611_v36, %v571_v47  ;;  %v615_v49 = vmax.f32 %v609_v46, 0.0 }
 0x11f   :  { %v616_v50 = vmax.f32 %v612_v48, 0.0 }
 0x121   :  { %v617_v51 = vpack.c.bf16 %v616_v50, %v615_v49 }
 0x123   :  { %996 = vmatmul.mubr.bf16.vlgmr.msra.gmra.mrb[8].mxu1 %v617_v51 }
 0x1f6   :  { %v723_v55 = vpop.f32.mrb[8].mxu1 }
 0x1f7   :  { %v724_v56 = vadd.f32 %v876_v54, %v723_v55  ;;  %v997_v57 = vpop.f32.mrb[9].mxu1 }
 0x1f8   :  { %v726_v58 = vpop.f32.mrb[10].mxu1 }
 0x1f9   :  { %v727_v59 = vadd.f32 %v876_v54, %v726_v58  ;;  %v998_v60 = vpop.f32.mrb[11].mxu1  ;;  %v730_v61 = vmax.f32 %v724_v56, 0.0 }
 0x1fb   :  { %v731_v62 = vmax.f32 %v727_v59, 0.0 }
 0x1fd   :  { %v732_v63 = vpack.c.bf16 %v731_v62, %v730_v61 }
 0x1ff   :  { %1008 = vmatmul.mubr.msk.bf16.vlgmr.msra.gmra.mrb[8].mxu0 %vm772_vm2, %v732_v63 }
 0x2d2   :  { %v810_v0 = vpop.f32.mrb[8].mxu0 }
 0x2d3   :  { %v811_v1 = vadd.f32 %v885_v43, %v810_v0  ;;  %v1009_v2 = vpop.f32.mrb[9].mxu0 }
 0x2d4   :  { %v813_v3 = vpop.f32.mrb[10].mxu0 }
 0x2d5   :  { %v817_v4 = vmax.f32 %v811_v1, 0.0  ;;  %v814_v5 = vadd.f32 %v885_v43, %v813_v3  ;;  %v1010_v6 = vpop.f32.mrb[11].mxu0 }
 0x2d7   :  { %819 = vst [vmem:[%s1382_s7] sm:$0xff] %v817_v4  ;;  %v818_v7 = vmax.f32 %v814_v5, 0.0 }
 0x2d9   :  { %820 = vst [vmem:[%s1382_s7 + $0x8] sm:$0xff] %v818_v7 }

</bundles_post_ra>
